<compile_context>
chip_gen: v7x
topology: tpu7x:2x2x1
jax: 0.10.0
libtpu: 0.0.40
codegen_flags: <defaults>
</compile_context>

<pallas_src>
import jax
import jax.numpy as jnp
import numpy as np
from jax.experimental import pallas as pl
from jax.experimental.pallas import tpu as pltpu

P = 128               # lane-dense padded width for every hidden / output dim
EPS = 1e-5            # BatchNorm1d eps
NOISE_STD = 0.2       # AutoEncoder(noise=0.2)
KERNEL_SIZE = 3
FEATURE_DIM = 64
MAX_BATCH_TILE = 512  # rows per grid step (sublane-aligned; ~0.5 MiB of activations)


def _round_up(n, m):
    return ((n + m - 1) // m) * m


# ------------------------------- Pallas kernel -------------------------------


def _autoencoder_kernel(xt_ref, win_ref, w1xd_ref, w2_ref, w3_ref, bias_ref, dec_ref):
    """One batch tile of AutoEncoder.forward (eval mode), fully fused.

    xt_ref   : (Bt, Din) f32   [xn (c_in*seq_len lanes) | zero-padded time window (Tp*c_in lanes)]
    win_ref  : (Din, 256) bf16 combined first-layer weights, cols [0:128) encoder / [128:256) decoder
    w1xd_ref : (128, 128) bf16 decoder Linear1 rows for the encoded bottleneck
    w2_ref   : (2,128,128) bf16 Linear2 (BN1 folded), [enc, dec]
    w3_ref   : (2,128,128) bf16 Linear3 (BN2 folded), [enc, dec]
    bias_ref : (2, 3, 128) f32 effective biases of the three linear stages per head
    dec_ref  : (Bt, 128)  f32  decoded output (cols [0, c_in) valid)
    """
    f32, bf16 = jnp.float32, jnp.bfloat16

    xt = xt_ref[...].astype(bf16)
    # Shared first-layer matmul for BOTH heads (encoder x+features, decoder features).
    h1 = jnp.dot(xt, win_ref[...], preferred_element_type=f32)          # (Bt, 2*128)

    be = bias_ref[0]                                                    # (3, 128)
    bd = bias_ref[1]

    # Encoder head: Linear1 -> ReLU -> Linear2 -> ReLU -> Linear3 (all BN/conv-bias pre-folded).
    h = jnp.maximum(h1[:, :P] + be[0:1, :], 0.0)
    h = jnp.maximum(jnp.dot(h.astype(bf16), w2_ref[0], preferred_element_type=f32) + be[1:2, :], 0.0)
    enc = jnp.dot(h.astype(bf16), w3_ref[0], preferred_element_type=f32) + be[2:3, :]

    # Decoder head: feature part comes from the shared matmul, x part is the in-register bottleneck.
    h = jnp.maximum(
        h1[:, P:] + jnp.dot(enc.astype(bf16), w1xd_ref[...], preferred_element_type=f32) + bd[0:1, :],
        0.0)
    h = jnp.maximum(jnp.dot(h.astype(bf16), w2_ref[1], preferred_element_type=f32) + bd[1:2, :], 0.0)
    dec_ref[...] = jnp.dot(h.astype(bf16), w3_ref[1], preferred_element_type=f32) + bd[2:3, :]


# ---------------------------------- wrapper -----------------------------------


def autoencoder_forward(packed, x, time, noise_key):
    """AutoEncoder.forward (eval mode) as a single batch-gridded Pallas kernel.

    Returns (decoded (B, c_in), xn (B, seq_len*c_in)); xn is the noised input actually used
    (computed in the wrapper, exposed for validation only — it is NOT a kernel output)."""
    B, S, C = x.shape
    Tw = time.shape[1]
    pad_l = (KERNEL_SIZE - 1) // 2
    pad_r = KERNEL_SIZE - 1 - pad_l

    # Multiplicative input noise, exactly the module's `x = x * (randn_like(x) * noise)`.
    x_flat = x.reshape(B, S * C)
    noise = jax.random.normal(noise_key, x_flat.shape, jnp.float32)
    xn = x_flat * (NOISE_STD * noise)

    # Compact kernel input: [xn | zero-padded time window] — layout-only ops, no 128-lane inflation.
    t_flat = jnp.pad(time, ((0, 0), (pad_l, pad_r), (0, 0))).reshape(B, (Tw + KERNEL_SIZE - 1) * C)
    xt = jnp.concatenate([xn, t_flat], axis=1)
    Din = xt.shape[1]

    Bt = min(MAX_BATCH_TILE, _round_up(B, 8))        # sublane-aligned batch tile
    Bp = _round_up(B, Bt)
    if Bp != B:
        xt = jnp.pad(xt, ((0, Bp - B), (0, 0)))

    dec = pl.pallas_call(
        _autoencoder_kernel,
        out_shape=jax.ShapeDtypeStruct((Bp, P), jnp.float32),
        grid=(Bp // Bt,),
        in_specs=[
            pl.BlockSpec((Bt, Din), lambda i: (i, 0)),       # batch-tiled activations
            pl.BlockSpec((Din, 2 * P), lambda i: (0, 0)),    # weights: constant index_map ->
            pl.BlockSpec((P, P), lambda i: (0, 0)),          #   DMA'd once, VMEM-resident
            pl.BlockSpec((2, P, P), lambda i: (0, 0, 0)),
            pl.BlockSpec((2, P, P), lambda i: (0, 0, 0)),
            pl.BlockSpec((2, 3, P), lambda i: (0, 0, 0)),
        ],
        out_specs=pl.BlockSpec((Bt, P), lambda i: (i, 0)),
        compiler_params=pltpu.CompilerParams(dimension_semantics=("parallel",)),
    )(xt, packed["w_in"], packed["w1x_dec"], packed["w2"], packed["w3"], packed["bias"])

    return dec[:B, :C], xn


# ------------------------ parameter folding / packing -------------------------


def _bn_scale_shift(bn):
    s = bn["gamma"] / jnp.sqrt(bn["var"] + EPS)
    return s, bn["beta"] - bn["mean"] * s


def _pad2(a, rows, cols):
    return jnp.zeros((rows, cols), jnp.float32).at[: a.shape[0], : a.shape[1]].set(a)


def _pad1(v, n):
    return jnp.zeros((n,), jnp.float32).at[: v.shape[0]].set(v)


def _fold_head(raw, d_x, T):
    """Fold one eval-mode MLP_Time head: BN0/BN1/BN2 + Conv1d bias folded into three (W, b) pairs,
    and the Conv1d ('same' padding, no activation) composed with Linear1's feature rows."""
    F_, C, K = raw["conv_w"].shape
    s0, b0 = _bn_scale_shift(raw["bn0"])
    s1, b1 = _bn_scale_shift(raw["bn1"])
    s2, b2 = _bn_scale_shift(raw["bn2"])
    w1 = raw["w1"].T                    # (d0, d1), rows ordered [x | feats (f*T + t)]
    w2 = raw["w2"].T                    # (d1, d2)
    w3 = raw["w3"].T                    # (d2, c_out)
    d1 = w1.shape[1]

    w1x, w1f = w1[:d_x], w1[d_x:]
    w1x_e = s0[:d_x, None] * w1x        # BN0 folded into the x rows
    w1f_e = s0[d_x:, None] * w1f        # BN0 folded into the feature rows

    # Linear1 effective bias: BN0 shifts + Conv1d bias routed through the feature rows.
    conv_bias_vec = jnp.repeat(raw["conv_b"], T)              # index f*T + t (NCL flatten order)
    B1 = b0[:d_x] @ w1x + b0[d_x:] @ w1f + conv_bias_vec @ w1f_e

    # Compose Conv1d with w1f_e:
    #   W_time[u*C + c, p] = sum_{f, k : 0 <= u-k < T} conv_w[f, c, k] * w1f_e[f*T + (u-k), p]
    w1f_r = w1f_e.reshape(F_, T, d1)
    Tp = T + K - 1
    w_time = jnp.zeros((Tp, C, d1), jnp.float32)
    for k in range(K):
        w_time = w_time.at[k:k + T].add(
            jnp.einsum("fc,ftp->tcp", raw["conv_w"][:, :, k], w1f_r))
    w_time = w_time.reshape(Tp * C, d1)

    # Fold BN1 into Linear2 and BN2 into Linear3 (+ its bias).
    w2_e = s1[:, None] * w2
    B2 = b1 @ w2
    w3_e = s2[:, None] * w3
    B3 = b2 @ w3 + raw["b3"]
    return dict(w_time=w_time, w1x=w1x_e, w2=w2_e, w3=w3_e, B1=B1, B2=B2, B3=B3)


def pack_autoencoder(raw_enc, raw_dec, c_in, seq_len, bottleneck_dim, time_win_len):
    """Fold + zero-pad the PyTorch-layout params into the lane-dense bf16 kernel layout."""
    assert bottleneck_dim == c_in, "decoder's Extractor must share `time`'s channel count"
    d_x = c_in * seq_len
    e = _fold_head(raw_enc, d_x, time_win_len)
    d = _fold_head(raw_dec, bottleneck_dim * seq_len, time_win_len)
    tc = e["w_time"].shape[0]                               # (T + K - 1) * c_in
    din = d_x + tc
    for h in (e, d):
        assert max(h["w1x"].shape[1], h["w2"].shape[1], h["w3"].shape[1]) <= P

    # Encoder first-layer rows = [w1x (xn lanes); w_time (time-window lanes)].
    w_in_e = jnp.zeros((din, P), jnp.float32)
    w_in_e = w_in_e.at[:d_x, : e["w1x"].shape[1]].set(e["w1x"])
    w_in_e = w_in_e.at[d_x:, : e["w_time"].shape[1]].set(e["w_time"])
    # Decoder first-layer feature rows only (its x input is `encoded`, routed via w1x_dec).
    w_in_d = jnp.zeros((din, P), jnp.float32).at[d_x:, : d["w_time"].shape[1]].set(d["w_time"])
    w_in = jnp.concatenate([w_in_e, w_in_d], axis=1)        # (din, 256)

    w1x_dec = _pad2(d["w1x"], P, P)
    w2 = jnp.stack([_pad2(e["w2"], P, P), _pad2(d["w2"], P, P)])
    w3 = jnp.stack([_pad2(e["w3"], P, P), _pad2(d["w3"], P, P)])
    bias = jnp.stack([jnp.stack([_pad1(h[n], P) for n in ("B1", "B2", "B3")]) for h in (e, d)])

    return dict(w_in=w_in.astype(jnp.bfloat16), w1x_dec=w1x_dec.astype(jnp.bfloat16),
                w2=w2.astype(jnp.bfloat16), w3=w3.astype(jnp.bfloat16),
                bias=bias.astype(jnp.float32))


# ----------------------- PyTorch-layout parameter init ------------------------


def init_mlp_time_raw(key, c_in, seq_len, time_win_len, n_hidden, c_out,
                      feature_dim=FEATURE_DIM, kernel_size=KERNEL_SIZE):
    d0 = c_in * seq_len + feature_dim * time_win_len
    d1, d2 = n_hidden
    ks = jax.random.split(key, 9)

    def bn(k, dim):
        k1, k2, k3, k4 = jax.random.split(k, 4)
        return dict(gamma=1.0 + 0.1 * jax.random.normal(k1, (dim,), jnp.float32),
                    beta=0.1 * jax.random.normal(k2, (dim,), jnp.float32),
                    mean=0.1 * jax.random.normal(k3, (dim,), jnp.float32),
                    var=1.0 + 0.1 * jnp.abs(jax.random.normal(k4, (dim,), jnp.float32)))

    return dict(
        conv_w=0.1 * jax.random.normal(ks[0], (feature_dim, c_in, kernel_size), jnp.float32),
        conv_b=0.1 * jax.random.normal(ks[1], (feature_dim,), jnp.float32),
        bn0=bn(ks[2], d0),
        w1=0.1 * jax.random.normal(ks[3], (d1, d0), jnp.float32),
        bn1=bn(ks[4], d1),
        w2=0.1 * jax.random.normal(ks[5], (d2, d1), jnp.float32),
        bn2=bn(ks[6], d2),
        w3=0.1 * jax.random.normal(ks[7], (c_out, d2), jnp.float32),
        b3=0.1 * jax.random.normal(ks[8], (c_out,), jnp.float32),
    )


# ----------------- float64 NumPy mirror of the PyTorch module -----------------


def _bn_np(h, bn):
    return (h - bn["mean"]) / np.sqrt(bn["var"] + EPS) * bn["gamma"] + bn["beta"]


def _mlp_time_ref_np(raw, x, time):
    """MLP_Time.forward (eval mode, autoencoder=None) in float64 NumPy."""
    B = x.shape[0]
    F_, C, K = raw["conv_w"].shape
    T = time.shape[1]
    pad_l = (K - 1) // 2
    tpad = np.pad(time, ((0, 0), (pad_l, K - 1 - pad_l), (0, 0)))
    conv = np.zeros((B, F_, T))
    for k in range(K):
        conv += np.einsum("fc,btc->bft", raw["conv_w"][:, :, k], tpad[:, k:k + T, :])
    conv += raw["conv_b"][None, :, None]
    h = np.concatenate([x.reshape(B, -1), conv.reshape(B, -1)], axis=1)
    h = _bn_np(h, raw["bn0"])
    h = _bn_np(np.maximum(h @ raw["w1"].T, 0.0), raw["bn1"])
    h = _bn_np(np.maximum(h @ raw["w2"].T, 0.0), raw["bn2"])
    return h @ raw["w3"].T + raw["b3"]


def _autoencoder_ref_np(raw_enc, raw_dec, xn, time):
    enc = _mlp_time_ref_np(raw_enc, xn, time)
    return _mlp_time_ref_np(raw_dec, enc[:, None, :], time)


# ------------------------------------ main ------------------------------------


if __name__ == "__main__":
    B, C_IN, SEQ_LEN, T_WIN = 4, 8, 1, 8
    BOTTLENECK = C_IN               # structural constraint of the reference module
    ENC_HIDDEN, DEC_HIDDEN = [32, 16], [16, 32]

    k_enc, k_dec, k_x, k_t, k_n = jax.random.split(jax.random.PRNGKey(0), 5)
    raw_enc = init_mlp_time_raw(k_enc, C_IN, SEQ_LEN, T_WIN, ENC_HIDDEN, BOTTLENECK)
    raw_dec = init_mlp_time_raw(k_dec, BOTTLENECK, SEQ_LEN, T_WIN, DEC_HIDDEN, C_IN)
    packed = pack_autoencoder(raw_enc, raw_dec, C_IN, SEQ_LEN, BOTTLENECK, T_WIN)

    x = jax.random.normal(k_x, (B, SEQ_LEN, C_IN), jnp.float32)
    time = jax.random.normal(k_t, (B, T_WIN, C_IN), jnp.float32)

    fwd = jax.jit(autoencoder_forward)
    decoded, xn = jax.block_until_ready(fwd(packed, x, time, k_n))

    assert decoded.shape == (B, C_IN), decoded.shape
    assert decoded.dtype == jnp.float32
    assert xn.shape == (B, SEQ_LEN * C_IN), xn.shape
    assert bool(jnp.all(jnp.isfinite(decoded)))

    # Validate the fused/folded bf16-weight kernel against a float64 NumPy mirror of the PyTorch
    # module, fed the exact noised input used by the kernel (noise itself is jax.random, not torch).
    to64 = lambda t: jax.tree_util.tree_map(lambda a: np.asarray(a, np.float64), t)
    ref = _autoencoder_ref_np(to64(raw_enc), to64(raw_dec),
                              np.asarray(xn, np.float64).reshape(B, SEQ_LEN, C_IN),
                              np.asarray(time, np.float64))
    err = float(np.max(np.abs(np.asarray(decoded, np.float64) - ref)))
    assert err < 3e-2, f"kernel/reference mismatch: max abs err = {err}"

    print("KERNEL_OK")
</pallas_src>

<mosaic_0001>
module attributes {stable_mosaic.version = 11 : i64} {
  func.func @_autoencoder_kernel(%arg0: i32, %arg1: memref<8x88xf32, #tpu.memory_space<vmem>>, %arg2: memref<88x256xbf16, #tpu.memory_space<vmem>>, %arg3: memref<128x128xbf16, #tpu.memory_space<vmem>>, %arg4: memref<2x128x128xbf16, #tpu.memory_space<vmem>>, %arg5: memref<2x128x128xbf16, #tpu.memory_space<vmem>>, %arg6: memref<2x3x128xf32, #tpu.memory_space<vmem>>, %arg7: memref<8x128xf32, #tpu.memory_space<vmem>>) attributes {dimension_semantics = [#tpu.dimension_semantics<parallel>], iteration_bounds = array<i64: 1>, scalar_prefetch = 0 : i64, scratch_operands = 0 : i64, tpu.core_type = #tpu.core_type<tc>, window_params = [{transform_indices = @transform_0, window_bounds = array<i64: 8, 88>}, {pipeline_mode = #tpu.pipeline_mode<synchronous>, transform_indices = @transform_1, window_bounds = array<i64: 88, 256>}, {pipeline_mode = #tpu.pipeline_mode<synchronous>, transform_indices = @transform_2, window_bounds = array<i64: 128, 128>}, {pipeline_mode = #tpu.pipeline_mode<synchronous>, transform_indices = @transform_3, window_bounds = array<i64: 2, 128, 128>}, {pipeline_mode = #tpu.pipeline_mode<synchronous>, transform_indices = @transform_4, window_bounds = array<i64: 2, 128, 128>}, {pipeline_mode = #tpu.pipeline_mode<synchronous>, transform_indices = @transform_5, window_bounds = array<i64: 2, 3, 128>}, {transform_indices = @transform_6, window_bounds = array<i64: 8, 128>}]} {
    %c0 = arith.constant 0 : index
    %c0_0 = arith.constant 0 : index
    %0 = vector.load %arg1[%c0, %c0_0] : memref<8x88xf32, #tpu.memory_space<vmem>>, vector<8x88xf32>
    %1 = arith.truncf %0 : vector<8x88xf32> to vector<8x88xbf16>
    %c0_1 = arith.constant 0 : index
    %c0_2 = arith.constant 0 : index
    %2 = vector.load %arg2[%c0_1, %c0_2] : memref<88x256xbf16, #tpu.memory_space<vmem>>, vector<88x256xbf16>
    %cst = arith.constant dense<0.000000e+00> : vector<8x256xf32>
    %3 = tpu.matmul %1, %2, %cst {dimension_numbers = #tpu.dot_dimension_numbers<[1], [0], [0], [1], [0, 0, 1, 1], [], []>} : vector<8x88xbf16>, vector<88x256xbf16>, vector<8x256xf32> -> vector<8x256xf32>
    %c0_3 = arith.constant 0 : index
    %c0_4 = arith.constant 0 : index
    %c0_5 = arith.constant 0 : index
    %4 = vector.load %arg6[%c0_3, %c0_4, %c0_5] : memref<2x3x128xf32, #tpu.memory_space<vmem>>, vector<1x3x128xf32>
    %5 = vector.shape_cast %4 : vector<1x3x128xf32> to vector<3x128xf32>
    %c1 = arith.constant 1 : index
    %c0_6 = arith.constant 0 : index
    %c0_7 = arith.constant 0 : index
    %6 = vector.load %arg6[%c1, %c0_6, %c0_7] : memref<2x3x128xf32, #tpu.memory_space<vmem>>, vector<1x3x128xf32>
    %7 = vector.shape_cast %6 : vector<1x3x128xf32> to vector<3x128xf32>
    %8 = vector.extract_strided_slice %3 {offsets = [0, 0], sizes = [8, 128], strides = [1, 1]} : vector<8x256xf32> to vector<8x128xf32>
    %9 = vector.extract_strided_slice %5 {offsets = [0, 0], sizes = [1, 128], strides = [1, 1]} : vector<3x128xf32> to vector<1x128xf32>
    %10 = vector.broadcast %9 : vector<1x128xf32> to vector<8x128xf32>
    %11 = arith.addf %8, %10 : vector<8x128xf32>
    %cst_8 = arith.constant 0.000000e+00 : f32
    %12 = vector.broadcast %cst_8 : f32 to vector<8x128xf32>
    %13 = arith.maximumf %11, %12 : vector<8x128xf32>
    %14 = arith.truncf %13 : vector<8x128xf32> to vector<8x128xbf16>
    %c0_9 = arith.constant 0 : index
    %c0_10 = arith.constant 0 : index
    %c0_11 = arith.constant 0 : index
    %15 = vector.load %arg4[%c0_9, %c0_10, %c0_11] : memref<2x128x128xbf16, #tpu.memory_space<vmem>>, vector<1x128x128xbf16>
    %16 = vector.shape_cast %15 : vector<1x128x128xbf16> to vector<128x128xbf16>
    %cst_12 = arith.constant dense<0.000000e+00> : vector<8x128xf32>
    %17 = tpu.matmul %14, %16, %cst_12 {dimension_numbers = #tpu.dot_dimension_numbers<[1], [0], [0], [1], [0, 0, 1, 1], [], []>} : vector<8x128xbf16>, vector<128x128xbf16>, vector<8x128xf32> -> vector<8x128xf32>
    %18 = vector.extract_strided_slice %5 {offsets = [1, 0], sizes = [1, 128], strides = [1, 1]} : vector<3x128xf32> to vector<1x128xf32>
    %19 = vector.broadcast %18 : vector<1x128xf32> to vector<8x128xf32>
    %20 = arith.addf %17, %19 : vector<8x128xf32>
    %cst_13 = arith.constant 0.000000e+00 : f32
    %21 = vector.broadcast %cst_13 : f32 to vector<8x128xf32>
    %22 = arith.maximumf %20, %21 : vector<8x128xf32>
    %23 = arith.truncf %22 : vector<8x128xf32> to vector<8x128xbf16>
    %c0_14 = arith.constant 0 : index
    %c0_15 = arith.constant 0 : index
    %c0_16 = arith.constant 0 : index
    %24 = vector.load %arg5[%c0_14, %c0_15, %c0_16] : memref<2x128x128xbf16, #tpu.memory_space<vmem>>, vector<1x128x128xbf16>
    %25 = vector.shape_cast %24 : vector<1x128x128xbf16> to vector<128x128xbf16>
    %cst_17 = arith.constant dense<0.000000e+00> : vector<8x128xf32>
    %26 = tpu.matmul %23, %25, %cst_17 {dimension_numbers = #tpu.dot_dimension_numbers<[1], [0], [0], [1], [0, 0, 1, 1], [], []>} : vector<8x128xbf16>, vector<128x128xbf16>, vector<8x128xf32> -> vector<8x128xf32>
    %27 = vector.extract_strided_slice %5 {offsets = [2, 0], sizes = [1, 128], strides = [1, 1]} : vector<3x128xf32> to vector<1x128xf32>
    %28 = vector.broadcast %27 : vector<1x128xf32> to vector<8x128xf32>
    %29 = arith.addf %26, %28 : vector<8x128xf32>
    %30 = vector.extract_strided_slice %3 {offsets = [0, 128], sizes = [8, 128], strides = [1, 1]} : vector<8x256xf32> to vector<8x128xf32>
    %31 = arith.truncf %29 : vector<8x128xf32> to vector<8x128xbf16>
    %c0_18 = arith.constant 0 : index
    %c0_19 = arith.constant 0 : index
    %32 = vector.load %arg3[%c0_18, %c0_19] : memref<128x128xbf16, #tpu.memory_space<vmem>>, vector<128x128xbf16>
    %cst_20 = arith.constant dense<0.000000e+00> : vector<8x128xf32>
    %33 = tpu.matmul %31, %32, %cst_20 {dimension_numbers = #tpu.dot_dimension_numbers<[1], [0], [0], [1], [0, 0, 1, 1], [], []>} : vector<8x128xbf16>, vector<128x128xbf16>, vector<8x128xf32> -> vector<8x128xf32>
    %34 = arith.addf %30, %33 : vector<8x128xf32>
    %35 = vector.extract_strided_slice %7 {offsets = [0, 0], sizes = [1, 128], strides = [1, 1]} : vector<3x128xf32> to vector<1x128xf32>
    %36 = vector.broadcast %35 : vector<1x128xf32> to vector<8x128xf32>
    %37 = arith.addf %34, %36 : vector<8x128xf32>
    %cst_21 = arith.constant 0.000000e+00 : f32
    %38 = vector.broadcast %cst_21 : f32 to vector<8x128xf32>
    %39 = arith.maximumf %37, %38 : vector<8x128xf32>
    %40 = arith.truncf %39 : vector<8x128xf32> to vector<8x128xbf16>
    %c1_22 = arith.constant 1 : index
    %c0_23 = arith.constant 0 : index
    %c0_24 = arith.constant 0 : index
    %41 = vector.load %arg4[%c1_22, %c0_23, %c0_24] : memref<2x128x128xbf16, #tpu.memory_space<vmem>>, vector<1x128x128xbf16>
    %42 = vector.shape_cast %41 : vector<1x128x128xbf16> to vector<128x128xbf16>
    %cst_25 = arith.constant dense<0.000000e+00> : vector<8x128xf32>
    %43 = tpu.matmul %40, %42, %cst_25 {dimension_numbers = #tpu.dot_dimension_numbers<[1], [0], [0], [1], [0, 0, 1, 1], [], []>} : vector<8x128xbf16>, vector<128x128xbf16>, vector<8x128xf32> -> vector<8x128xf32>
    %44 = vector.extract_strided_slice %7 {offsets = [1, 0], sizes = [1, 128], strides = [1, 1]} : vector<3x128xf32> to vector<1x128xf32>
    %45 = vector.broadcast %44 : vector<1x128xf32> to vector<8x128xf32>
    %46 = arith.addf %43, %45 : vector<8x128xf32>
    %cst_26 = arith.constant 0.000000e+00 : f32
    %47 = vector.broadcast %cst_26 : f32 to vector<8x128xf32>
    %48 = arith.maximumf %46, %47 : vector<8x128xf32>
    %49 = arith.truncf %48 : vector<8x128xf32> to vector<8x128xbf16>
    %c1_27 = arith.constant 1 : index
    %c0_28 = arith.constant 0 : index
    %c0_29 = arith.constant 0 : index
    %50 = vector.load %arg5[%c1_27, %c0_28, %c0_29] : memref<2x128x128xbf16, #tpu.memory_space<vmem>>, vector<1x128x128xbf16>
    %51 = vector.shape_cast %50 : vector<1x128x128xbf16> to vector<128x128xbf16>
    %cst_30 = arith.constant dense<0.000000e+00> : vector<8x128xf32>
    %52 = tpu.matmul %49, %51, %cst_30 {dimension_numbers = #tpu.dot_dimension_numbers<[1], [0], [0], [1], [0, 0, 1, 1], [], []>} : vector<8x128xbf16>, vector<128x128xbf16>, vector<8x128xf32> -> vector<8x128xf32>
    %53 = vector.extract_strided_slice %7 {offsets = [2, 0], sizes = [1, 128], strides = [1, 1]} : vector<3x128xf32> to vector<1x128xf32>
    %54 = vector.broadcast %53 : vector<1x128xf32> to vector<8x128xf32>
    %55 = arith.addf %52, %54 : vector<8x128xf32>
    %c0_31 = arith.constant 0 : index
    %c0_32 = arith.constant 0 : index
    %56 = vector.load %arg7[%c0_31, %c0_32] : memref<8x128xf32, #tpu.memory_space<vmem>>, vector<8x128xf32>
    tpu.vector_store %arg7[%c0_31, %c0_32], %55 {strides = array<i32>} : memref<8x128xf32, #tpu.memory_space<vmem>>, vector<8x128xf32>,
    return
  }
  func.func @transform_0(%arg0: i32) -> (i32, i32) {
    %c0_i32 = arith.constant 0 : i32
    %c0_i32_0 = arith.constant 0 : i32
    return %arg0, %c0_i32 : i32, i32
  }
  func.func @transform_1(%arg0: i32) -> (i32, i32) {
    %c0_i32 = arith.constant 0 : i32
    %c0_i32_0 = arith.constant 0 : i32
    %c0_i32_1 = arith.constant 0 : i32
    return %c0_i32, %c0_i32_0 : i32, i32
  }
  func.func @transform_2(%arg0: i32) -> (i32, i32) {
    %c0_i32 = arith.constant 0 : i32
    %c0_i32_0 = arith.constant 0 : i32
    %c0_i32_1 = arith.constant 0 : i32
    return %c0_i32, %c0_i32_0 : i32, i32
  }
  func.func @transform_3(%arg0: i32) -> (i32, i32, i32) {
    %c0_i32 = arith.constant 0 : i32
    %c0_i32_0 = arith.constant 0 : i32
    %c0_i32_1 = arith.constant 0 : i32
    %c0_i32_2 = arith.constant 0 : i32
    return %c0_i32, %c0_i32_0, %c0_i32_1 : i32, i32, i32
  }
  func.func @transform_4(%arg0: i32) -> (i32, i32, i32) {
    %c0_i32 = arith.constant 0 : i32
    %c0_i32_0 = arith.constant 0 : i32
    %c0_i32_1 = arith.constant 0 : i32
    %c0_i32_2 = arith.constant 0 : i32
    return %c0_i32, %c0_i32_0, %c0_i32_1 : i32, i32, i32
  }
  func.func @transform_5(%arg0: i32) -> (i32, i32, i32) {
    %c0_i32 = arith.constant 0 : i32
    %c0_i32_0 = arith.constant 0 : i32
    %c0_i32_1 = arith.constant 0 : i32
    %c0_i32_2 = arith.constant 0 : i32
    return %c0_i32, %c0_i32_0, %c0_i32_1 : i32, i32, i32
  }
  func.func @transform_6(%arg0: i32) -> (i32, i32) {
    %c0_i32 = arith.constant 0 : i32
    %c0_i32_0 = arith.constant 0 : i32
    return %arg0, %c0_i32 : i32, i32
  }
}

</mosaic_0001>

<bundles_post_ra>
// kernel: autoencoder_forward.1
= control target key start
LH: loop header
LB: loop body
LE: loop exit
PB: predicated region body
PF: predicated region fallthrough
CT: control target
= control target key end

     0   :  { %11 = vsyncpa [#allocation3], 0  ;;  %s1336_s0 = inlined_call_operand.vmem [shape: f32[8,88], index: 0, kind: input, shape index: {}]   ;;  %s1337_s1 = inlined_call_operand.hbm [shape: bf16[88,256], index: 1, kind: input, shape index: {}]   ;;  %s1338_s2 = inlined_call_operand.hbm [shape: bf16[128,128], index: 2, kind: input, shape index: {}]   ;;  %s1339_s3 = inlined_call_operand.vmem [shape: bf16[2,128,128], index: 3, kind: input, shape index: {}]   ;;  %s1340_s4 = inlined_call_operand.vmem [shape: bf16[2,128,128], index: 4, kind: input, shape index: {}]   ;;  %s1341_s5 = inlined_call_operand.vmem [shape: f32[2,3,128], index: 5, kind: input, shape index: {}]   ;;  %s1342_s6 = inlined_call_operand.vmem [shape: f32[8,128], index: 6, kind: output, shape index: {}]  }
   0x1   :  { %12 = vsyncpa [#allocation5], 0  ;;  %s1086_s21 = smov [#allocation2]   ;;  %s1038_s25 = scalar_lea.hbm %s1337_s1, 1408 }
   0x2   :  { %s20_s22 = sshll.u32 %s1086_s21, 4  ;;  %p1039_p0 = scmp.ne.s32.totalorder %s1337_s1, %s1038_s25  ;;  %s21_s22 = int_to_ptr.vmem [resolvable:$true] %s20_s22 }
   0x3   :  { %p1042_p1 = scmp.lt.u32.totalorder %s1038_s25, %s1337_s1 }
   0x5   :  { %p1044_p2 = pnand %p1042_p1, %p1039_p0 }
   0x7   :  { %1047 = shalt.err (!%p1044_p2)
}
   0x8   :  { %s1048_s30 = scalar_lea.vmem %s21_s22, 1408  ;;  %p1053_p4 = scmp.lt.s32.totalorder %s21_s22, %s21_s22 }
   0x9   :  { %p1049_p3 = scmp.ne.s32.totalorder %s21_s22, %s1048_s30  ;;  %p1054_p5 = scmp.lt.s32.totalorder %s1048_s30, %s1048_s30 }
   0xb   :  { %p1055_p6 = por %p1054_p5, %p1053_p4 }
   0xd   :  { %p1056_p7 = pnand %p1055_p6, %p1049_p3 }
   0xf   :  { %1059 = shalt.err (!%p1056_p7)
}
  0x10   :  { %s1087_s7 = smov 128   ;;  %s1088_s8 = smov 8  }
  0x11   :  { %26 = dma.hbm_to_vmem [thread:$0]  %s1337_s1, 1408, %s21_s22, [#allocation3], %s1087_s7, %s1087_s7, %s1088_s8  }
  0x12   :  { %s1089_s11 = smov [#allocation4]   ;;  %s1060_s15 = scalar_lea.hbm %s1338_s2, 1024 }
  0x13   :  { %s32_s12 = sshll.u32 %s1089_s11, 4  ;;  %p1061_p8 = scmp.ne.s32.totalorder %s1338_s2, %s1060_s15  ;;  %s33_s12 = int_to_ptr.vmem [resolvable:$true] %s32_s12 }
  0x14   :  { %p1064_p9 = scmp.lt.u32.totalorder %s1060_s15, %s1338_s2 }
  0x16   :  { %p1066_p10 = pnand %p1064_p9, %p1061_p8 }
  0x18   :  { %1069 = shalt.err (!%p1066_p10)
}
  0x19   :  { %s1070_s20 = scalar_lea.vmem %s33_s12, 1024  ;;  %p1075_p12 = scmp.lt.s32.totalorder %s33_s12, %s33_s12 }
  0x1a   :  { %p1071_p11 = scmp.ne.s32.totalorder %s33_s12, %s1070_s20  ;;  %p1076_p13 = scmp.lt.s32.totalorder %s1070_s20, %s1070_s20 }
  0x1c   :  { %p1077_p0 = por %p1076_p13, %p1075_p12 }
  0x1e   :  { %p1078_p1 = pnand %p1077_p0, %p1071_p11 }
  0x20   :  { %1081 = shalt.err (!%p1078_p1)
}
  0x21   :  { %s1090_s1 = smov 64   ;;  %s1091_s21 = smov 4  }
  0x22   :  { %38 = dma.hbm_to_vmem [thread:$0]  %s1338_s2, 1024, %s33_s12, [#allocation5], %s1090_s1, %s1090_s1, %s1091_s21  }
  0x23   :  { %1082 = dma.done.wait [#allocation3], 1408  }
  0x24   :  { %1083 = vsyncadd [#allocation3], 4294965888 }
  0x25   :  { %1084 = dma.done.wait [#allocation5], 1024  }
  0x26   :  { %1085 = vsyncadd [#allocation5], 4294966272  ;;  %v1092_v0 = vmov 0   ;;  %v1093_v1 = vmov 0.0   ;;  %v981_v2 = vld [vmem:[#allocation2 + $0x4] ss:$8 sps:$4 sm:$0xff]   ;;  %v175_v32 = vlaneseq }
  0x27   :  { %163 = vmatprep.mubr.bf16.mxu0 %v1092_v0  ;;  %872 = vmatprep.subr.bf16.mxu1 %v1093_v1  ;;  %v983_v3 = vld [vmem:[#allocation2] ss:$8 sps:$4 sm:$0xff]   ;;  %v984_v4 = vld [vmem:[#allocation2 + $0x14] ss:$8 sps:$4 sm:$0xff]   ;;  %v986_v5 = vld [vmem:[#allocation2 + $0x10] ss:$8 sps:$4 sm:$0xff]  }
  0x28   :  { %131 = vmatprep.subr.bf16.mxu0 %v981_v2  ;;  %v987_v6 = vld [vmem:[#allocation2 + $0x24] ss:$8 sps:$4 sm:$0xff]   ;;  %v989_v7 = vld [vmem:[#allocation2 + $0x20] ss:$8 sps:$4 sm:$0xff]   ;;  %v64_v8 = vld [vmem:[#allocation2 + $0x50] sm:$0xff]  ;;  %vm124_vm0 = vcmask 1043456  }
  0x29   :  { %132 = vmatpush1.bf16.msra.mxu0 %v983_v3  ;;  %v990_v9 = vld [vmem:[#allocation2 + $0x34] ss:$8 sps:$4 sm:$0xff]   ;;  %v998_v10 = vld [vmem:[%s1339_s3] sm:$0xff]   ;;  %v750_v11 = vcombine.low %v64_v8, %v64_v8  ;;  %v999_v12 = vld [vmem:[%s1339_s3 + $0x8] sm:$0xff]   ;;  %vm120_vm1 = vcmask 719872   ;;  %v751_v18 = vcombine.high %v64_v8, %v64_v8  ;;  %vm1094_vm2 = vmmov 0  }
  0x2a   :  { %133 = vmatprep.subr.bf16.mxu0 %v984_v4  ;;  %873 = vmatpush3.bf16.msra.mxu1 %v998_v10  ;;  %v992_v13 = vld [vmem:[#allocation2 + $0x30] ss:$8 sps:$4 sm:$0xff]   ;;  %v993_v14 = vld [vmem:[#allocation2 + $0x44] ss:$8 sps:$4 sm:$0xff]   ;;  %v995_v15 = vld [vmem:[#allocation2 + $0x40] ss:$8 sps:$4 sm:$0xff]  }
  0x2b   :  { %874 = vmatprep.subr.bf16.mxu1 %v1093_v1  ;;  %v126_v16 = vsel %vm124_vm0, %v750_v11, 0  ;;  %v1000_v17 = vld [vmem:[%s1339_s3 + $0x10] sm:$0xff]   ;;  %v1001_v19 = vld [vmem:[%s1339_s3 + $0x18] sm:$0xff]   ;;  %v52_v20 = vld [vmem:[%s1336_s0] sm:$0xff]  ;;  %888 = vmatprep.mubr.msk.bf16.mxu1 %vm1094_vm2, %v1093_v1  ;;  %v1222_v33 = vshrl.u32 %v175_v32, 7 }
  0x2c   :  { %v1002_v21 = vld [vmem:[%s1339_s3 + $0x20] sm:$0xff]   ;;  %v53_v22 = vpack.c.bf16 %v52_v20, %v52_v20  ;;  %v1003_v23 = vld [vmem:[%s1339_s3 + $0x28] sm:$0xff]   ;;  %v1004_v24 = vld [vmem:[%s1339_s3 + $0x30] sm:$0xff]  }
  0x2d   :  { %134 = vmatpush1.bf16.msra.mxu0 %v986_v5  ;;  %v1005_v25 = vld [vmem:[%s1339_s3 + $0x38] sm:$0xff]   ;;  %v1006_v26 = vld [vmem:[%s1340_s4] sm:$0xff]   ;;  %v1007_v27 = vld [vmem:[%s1340_s4 + $0x8] sm:$0xff]   ;;  %v177_v34 = vsub.s32 0, %v1222_v33  ;;  %v200_v53 = vsub.s32 1, %v1222_v33 }
  0x2e   :  { %135 = vmatprep.subr.bf16.mxu0 %v987_v6  ;;  %875 = vmatpush3.bf16.msra.mxu1 %v999_v12  ;;  %v1008_v28 = vld [vmem:[%s1340_s4 + $0x10] sm:$0xff]   ;;  %v1009_v29 = vld [vmem:[%s1340_s4 + $0x18] sm:$0xff]   ;;  %v1010_v30 = vld [vmem:[%s1340_s4 + $0x20] sm:$0xff]   ;;  %v310_v6 = vsub.s32 2, %v1222_v33 }
  0x2f   :  { %876 = vmatprep.subr.bf16.mxu1 %v1093_v1  ;;  %v1011_v31 = vld [vmem:[%s1340_s4 + $0x28] sm:$0xff]   ;;  %v1228_v35 = vld [vmem:[%s1341_s5] sm:$0x7]  ;;  %v1012_v44 = vld [vmem:[%s1340_s4 + $0x30] sm:$0xff]  }
  0x30   :  { %v178_v36 = vrot.slane %v1228_v35, %v177_v34  ;;  %v1013_v45 = vld [vmem:[%s1340_s4 + $0x38] sm:$0xff]   ;;  %v1015_v47 = vld [vmem:[#allocation4 + $0x8] sm:$0xff]   ;;  %v1016_v48 = vld [vmem:[#allocation4 + $0x10] sm:$0xff]   ;;  %v201_v54 = vrot.slane %v1228_v35, %v200_v53 }
  0x31   :  { %136 = vmatpush1.bf16.msra.mxu0 %v989_v7  ;;  %v1014_v46 = vld [vmem:[#allocation4] sm:$0xff]   ;;  %v1017_v49 = vld [vmem:[#allocation4 + $0x18] sm:$0xff]   ;;  %v1019_v51 = vld [vmem:[#allocation4 + $0x28] sm:$0xff]   ;;  %v311_v7 = vrot.slane %v1228_v35, %v310_v6 }
  0x32   :  { %137 = vmatprep.subr.bf16.mxu0 %v990_v9  ;;  %877 = vmatpush3.bf16.msra.mxu1 %v1000_v17  ;;  %v1018_v50 = vld [vmem:[#allocation4 + $0x20] sm:$0xff]   ;;  %v1020_v52 = vld [vmem:[#allocation4 + $0x30] sm:$0xff]   ;;  %v1021_v62 = vld [vmem:[#allocation4 + $0x38] sm:$0xff]  }
  0x33   :  { %878 = vmatprep.subr.bf16.mxu1 %v1093_v1  ;;  %v1022_v63 = vld [vmem:[%s1339_s3 + $0x40] sm:$0xff]   ;;  %v1023_v0 = vld [vmem:[%s1339_s3 + $0x48] sm:$0xff]   ;;  %v1024_v2 = vld [vmem:[%s1339_s3 + $0x50] sm:$0xff]  }
  0x34   :  { %v1025_v3 = vld [vmem:[%s1339_s3 + $0x58] sm:$0xff]   ;;  %v1026_v4 = vld [vmem:[%s1339_s3 + $0x60] sm:$0xff]   ;;  %v1027_v5 = vld [vmem:[%s1339_s3 + $0x68] sm:$0xff]  }
  0x35   :  { %138 = vmatpush1.bf16.msra.mxu0 %v992_v13  ;;  %v1031_v17 = vld [vmem:[%s1340_s4 + $0x48] sm:$0xff]   ;;  %v1034_v20 = vld [vmem:[%s1340_s4 + $0x60] sm:$0xff]   ;;  %v1036_v32 = vld [vmem:[%s1340_s4 + $0x70] sm:$0xff]  }
  0x36   :  { %139 = vmatprep.subr.bf16.mxu0 %v993_v14  ;;  %879 = vmatpush3.bf16.msra.mxu1 %v1001_v19  ;;  %v1028_v14 = vld [vmem:[%s1339_s3 + $0x70] sm:$0xff]   ;;  %v1033_v19 = vld [vmem:[%s1340_s4 + $0x58] sm:$0xff]  }
  0x37   :  { %880 = vmatprep.subr.bf16.mxu1 %v1093_v1 }
  0x39   :  { %140 = vmatpush1.bf16.msra.mxu0 %v995_v15  ;;  %v1029_v15 = vld [vmem:[%s1339_s3 + $0x78] sm:$0xff]  }
  0x3a   :  { %752 = vmatprep.subr.msk.bf16.mxu0 %vm124_vm0, %v751_v18  ;;  %881 = vmatpush3.bf16.msra.mxu1 %v1002_v21  ;;  %v1032_v18 = vld [vmem:[%s1340_s4 + $0x50] sm:$0xff]   ;;  %v1035_v21 = vld [vmem:[%s1340_s4 + $0x68] sm:$0xff]  }
  0x3b   :  { %882 = vmatprep.subr.bf16.mxu1 %v1093_v1 }
  0x3d   :  { %142 = vmatpush1.bf16.msra.mxu0 %v126_v16  ;;  %v1030_v16 = vld [vmem:[%s1340_s4 + $0x40] sm:$0xff]  }
  0x3e   :  { %892 = vmatprep.subr.bf16.mxu0 %v1093_v1  ;;  %883 = vmatpush3.bf16.msra.mxu1 %v1003_v23 }
  0x3f   :  { %884 = vmatprep.subr.bf16.mxu1 %v1093_v1 }
  0x40   :  { %753 = vmatmul.mubr.msk.bf16.vlgmr.msra.gmra.mrb[0].mxu0 %vm120_vm1, %v53_v22  ;;  %v754_v22 = vld [vmem:[%s1341_s5 + $0x4] sm:$0x7] }
  0x41   :  { %908 = vmatprep.mubr.msk.bf16.mxu0 %vm1094_vm2, %v1093_v1  ;;  %893 = vmatpush3.bf16.msra.mxu0 %v1006_v26  ;;  %v509_v23 = vrot.slane %v754_v22, %v177_v34  ;;  %v1037_v34 = vld [vmem:[%s1340_s4 + $0x78] sm:$0xff]   ;;  %v533_v35 = vrot.slane %v754_v22, %v200_v53 }
  0x42   :  { %885 = vmatpush3.bf16.msra.mxu1 %v1004_v24  ;;  %894 = vmatprep.subr.bf16.mxu0 %v1093_v1 }
  0x43   :  { %886 = vmatprep.subr.bf16.mxu1 %v1093_v1 }
  0x45   :  { %895 = vmatpush3.bf16.msra.mxu0 %v1007_v27 }
  0x46   :  { %887 = vmatpush3.bf16.msra.mxu1 %v1005_v25  ;;  %896 = vmatprep.subr.bf16.mxu0 %v1093_v1 }
  0x47   :  { %912 = vmatprep.subr.bf16.mxu1 %v1093_v1 }
  0x49   :  { %897 = vmatpush3.bf16.msra.mxu0 %v1008_v28 }
  0x4a   :  { %898 = vmatprep.subr.bf16.mxu0 %v1093_v1 }
  0x4d   :  { %899 = vmatpush3.bf16.msra.mxu0 %v1009_v29 }
  0x4e   :  { %900 = vmatprep.subr.bf16.mxu0 %v1093_v1 }
  0x51   :  { %901 = vmatpush3.bf16.msra.mxu0 %v1010_v30 }
  0x52   :  { %902 = vmatprep.subr.bf16.mxu0 %v1093_v1 }
  0x55   :  { %903 = vmatpush3.bf16.msra.mxu0 %v1011_v31 }
  0x56   :  { %904 = vmatprep.subr.bf16.mxu0 %v1093_v1 }
  0x59   :  { %905 = vmatpush3.bf16.msra.mxu0 %v1012_v44 }
  0x5a   :  { %906 = vmatprep.subr.bf16.mxu0 %v1093_v1 }
  0x5d   :  { %907 = vmatpush3.bf16.msra.mxu0 %v1013_v45 }
  0x5e   :  { %932 = vmatprep.subr.bf16.mxu0 %v1093_v1 }
 0x113   :  { %v165_v37 = vpop.f32.mrb[0].mxu0 }
 0x114   :  { %v179_v38 = vadd.f32 %v178_v36, %v165_v37  ;;  %v1233_v39 = vpop.f32.mrb[1].mxu0 }
 0x115   :  { %v169_v40 = vpop.f32.mrb[2].mxu0 }
 0x116   :  { %v180_v41 = vmax.f32 %v179_v38, 0.0  ;;  %v170_v42 = vpop.f32.mrb[3].mxu0 }
 0x118   :  { %v181_v43 = vpack.c.bf16 %v180_v41, %v180_v41 }
 0x11a   :  { %889 = vmatmul.mubr.bf16.vlgmr.msra.gmra.mrb[0].mxu1 %v181_v43  ;;  %v644_v43 = vrot.slane %v754_v22, %v310_v6 }
 0x11b   :  { %928 = vmatprep.mubr.msk.bf16.mxu1 %vm1094_vm2, %v1093_v1  ;;  %913 = vmatpush3.bf16.msra.mxu1 %v1014_v46 }
 0x11c   :  { %914 = vmatprep.subr.bf16.mxu1 %v1093_v1 }
 0x11f   :  { %915 = vmatpush3.bf16.msra.mxu1 %v1015_v47 }
 0x120   :  { %916 = vmatprep.subr.bf16.mxu1 %v1093_v1 }
 0x123   :  { %917 = vmatpush3.bf16.msra.mxu1 %v1016_v48 }
 0x124   :  { %918 = vmatprep.subr.bf16.mxu1 %v1093_v1 }
 0x127   :  { %919 = vmatpush3.bf16.msra.mxu1 %v1017_v49 }
 0x128   :  { %920 = vmatprep.subr.bf16.mxu1 %v1093_v1 }
 0x12b   :  { %921 = vmatpush3.bf16.msra.mxu1 %v1018_v50 }
 0x12c   :  { %922 = vmatprep.subr.bf16.mxu1 %v1093_v1 }
 0x12f   :  { %923 = vmatpush3.bf16.msra.mxu1 %v1019_v51 }
 0x130   :  { %924 = vmatprep.subr.bf16.mxu1 %v1093_v1 }
 0x133   :  { %925 = vmatpush3.bf16.msra.mxu1 %v1020_v52 }
 0x134   :  { %926 = vmatprep.subr.bf16.mxu1 %v1093_v1 }
 0x137   :  { %927 = vmatpush3.bf16.msra.mxu1 %v1021_v62 }
 0x138   :  { %952 = vmatprep.subr.bf16.mxu1 %v1093_v1 }
 0x1ed   :  { %v284_v55 = vpop.f32.mrb[0].mxu1 }
 0x1ee   :  { %v285_v56 = vadd.f32 %v284_v55, %v201_v54  ;;  %v890_v57 = vpop.f32.mrb[1].mxu1 }
 0x1ef   :  { %v287_v58 = vpop.f32.mrb[2].mxu1 }
 0x1f0   :  { %v290_v59 = vmax.f32 %v285_v56, 0.0  ;;  %v891_v60 = vpop.f32.mrb[3].mxu1 }
 0x1f2   :  { %v291_v61 = vpack.c.bf16 %v290_v59, %v290_v59 }
 0x1f4   :  { %909 = vmatmul.mubr.bf16.vlgmr.msra.gmra.mrb[4].mxu0 %v291_v61 }
 0x1f5   :  { %948 = vmatprep.mubr.msk.bf16.mxu0 %vm1094_vm2, %v1093_v1  ;;  %933 = vmatpush3.bf16.msra.mxu0 %v1022_v63 }
 0x1f6   :  { %934 = vmatprep.subr.bf16.mxu0 %v1093_v1 }
 0x1f9   :  { %935 = vmatpush3.bf16.msra.mxu0 %v1023_v0 }
 0x1fa   :  { %936 = vmatprep.subr.bf16.mxu0 %v1093_v1 }
 0x1fd   :  { %937 = vmatpush3.bf16.msra.mxu0 %v1024_v2 }
 0x1fe   :  { %938 = vmatprep.subr.bf16.mxu0 %v1093_v1 }
 0x201   :  { %939 = vmatpush3.bf16.msra.mxu0 %v1025_v3 }
 0x202   :  { %940 = vmatprep.subr.bf16.mxu0 %v1093_v1 }
 0x205   :  { %941 = vmatpush3.bf16.msra.mxu0 %v1026_v4 }
 0x206   :  { %942 = vmatprep.subr.bf16.mxu0 %v1093_v1 }
 0x209   :  { %943 = vmatpush3.bf16.msra.mxu0 %v1027_v5 }
 0x20a   :  { %944 = vmatprep.subr.bf16.mxu0 %v1093_v1 }
 0x20d   :  { %945 = vmatpush3.bf16.msra.mxu0 %v1028_v14 }
 0x20e   :  { %946 = vmatprep.subr.bf16.mxu0 %v1093_v1 }
 0x211   :  { %947 = vmatpush3.bf16.msra.mxu0 %v1029_v15 }
 0x2c7   :  { %v394_v8 = vpop.f32.mrb[4].mxu0 }
 0x2c8   :  { %v395_v9 = vadd.f32 %v394_v8, %v311_v7  ;;  %v910_v10 = vpop.f32.mrb[5].mxu0 }
 0x2c9   :  { %v397_v11 = vpop.f32.mrb[6].mxu0 }
 0x2ca   :  { %v400_v12 = vpack.c.bf16 %v395_v9, %v395_v9  ;;  %v911_v13 = vpop.f32.mrb[7].mxu0 }
 0x2cc   :  { %929 = vmatmul.mubr.bf16.vlgmr.msra.gmra.mrb[4].mxu1 %v400_v12 }
 0x2cd   :  { %968 = vmatprep.mubr.msk.bf16.mxu1 %vm1094_vm2, %v1093_v1  ;;  %953 = vmatpush3.bf16.msra.mxu1 %v1030_v16 }
 0x2ce   :  { %954 = vmatprep.subr.bf16.mxu1 %v1093_v1 }
 0x2d1   :  { %955 = vmatpush3.bf16.msra.mxu1 %v1031_v17 }
 0x2d2   :  { %956 = vmatprep.subr.bf16.mxu1 %v1093_v1 }
 0x2d5   :  { %957 = vmatpush3.bf16.msra.mxu1 %v1032_v18 }
 0x2d6   :  { %958 = vmatprep.subr.bf16.mxu1 %v1093_v1 }
 0x2d9   :  { %959 = vmatpush3.bf16.msra.mxu1 %v1033_v19 }
 0x2da   :  { %960 = vmatprep.subr.bf16.mxu1 %v1093_v1 }
 0x2dd   :  { %961 = vmatpush3.bf16.msra.mxu1 %v1034_v20 }
 0x2de   :  { %962 = vmatprep.subr.bf16.mxu1 %v1093_v1 }
 0x2e1   :  { %963 = vmatpush3.bf16.msra.mxu1 %v1035_v21 }
 0x2e2   :  { %964 = vmatprep.subr.bf16.mxu1 %v1093_v1 }
 0x2e5   :  { %965 = vmatpush3.bf16.msra.mxu1 %v1036_v32 }
 0x2e6   :  { %966 = vmatprep.subr.bf16.mxu1 %v1093_v1 }
 0x2e9   :  { %967 = vmatpush3.bf16.msra.mxu1 %v1037_v34 }
 0x39f   :  { %v499_v24 = vpop.f32.mrb[4].mxu1 }
 0x3a0   :  { %v505_v25 = vadd.f32 %v499_v24, %v1233_v39  ;;  %v930_v26 = vpop.f32.mrb[5].mxu1 }
 0x3a1   :  { %v502_v27 = vpop.f32.mrb[6].mxu1 }
 0x3a2   :  { %v510_v28 = vadd.f32 %v509_v23, %v505_v25  ;;  %v931_v29 = vpop.f32.mrb[7].mxu1 }
 0x3a4   :  { %v511_v30 = vmax.f32 %v510_v28, 0.0 }
 0x3a6   :  { %v512_v31 = vpack.c.bf16 %v511_v30, %v511_v30 }
 0x3a8   :  { %949 = vmatmul.mubr.bf16.vlgmr.msra.gmra.mrb[8].mxu0 %v512_v31 }
 0x47b   :  { %v616_v36 = vpop.f32.mrb[8].mxu0 }
 0x47c   :  { %v617_v37 = vadd.f32 %v616_v36, %v533_v35  ;;  %v950_v38 = vpop.f32.mrb[9].mxu0 }
 0x47d   :  { %v619_v39 = vpop.f32.mrb[10].mxu0 }
 0x47e   :  { %v622_v40 = vmax.f32 %v617_v37, 0.0  ;;  %v951_v41 = vpop.f32.mrb[11].mxu0 }
 0x480   :  { %v623_v42 = vpack.c.bf16 %v622_v40, %v622_v40 }
 0x482   :  { %969 = vmatmul.mubr.bf16.vlgmr.msra.gmra.mrb[8].mxu1 %v623_v42 }
 0x555   :  { %v727_v44 = vpop.f32.mrb[8].mxu1 }
 0x556   :  { %v728_v45 = vadd.f32 %v727_v44, %v644_v43  ;;  %v970_v1 = vpop.f32.mrb[9].mxu1 }
 0x557   :  { %v730_v46 = vpop.f32.mrb[10].mxu1 }
 0x558   :  { %733 = vst [vmem:[%s1342_s6] sm:$0xff] %v728_v45  ;;  %v971_v47 = vpop.f32.mrb[11].mxu1 }
 0x559   :  { %738 = vsyncpa [#allocation3], 1 }
 0x55a   :  { %739 = vsyncpa [#allocation5], 1 }

</bundles_post_ra>
